<compile_context>
chip_gen: v6e
topology: v6e:2x2x1
jax: 0.10.0
libtpu: 0.0.40
codegen_flags: <defaults>
</compile_context>

<pallas_src>
import functools

import jax
import jax.numpy as jnp
from jax import lax
from jax.experimental import pallas as pl
from jax.experimental.pallas import tpu as pltpu

EPS = 1e-12  # torch.nn.functional.normalize default eps


def xca_kernel(x_ref, w3_ref, scale_ref, wp_ref, bp_ref, o_ref, *, num_heads):
    # x_ref    : (1, N, C)   bf16  per-batch tile
    # w3_ref   : (3C, C)     bf16  qkv.weight (rows = [q heads | k heads | v heads])
    # scale_ref: (2C, 1)     f32   per-row scale = [temperature per q row | ones for k rows]
    # wp_ref   : (C, C_out)  bf16  proj.weight^T
    # bp_ref   : (1, C_out)  f32   proj.bias
    # o_ref    : (1, N, C_out)
    x = x_ref[0]                                   # (N, C) bf16
    N, C = x.shape
    H = num_heads
    Dh = C // H

    # One MXU call for all of q^T, k^T, v^T: (3C, C) x (N, C)^T -> (3C, N), f32 acc.
    # Channels land on sublanes, tokens on lanes, so the L2-norm below is a
    # plain lane reduction.
    qkvT = lax.dot_general(w3_ref[...], x, (((1,), (1,)), ((), ())),
                           preferred_element_type=jnp.float32)          # (3C, N)

    # F.normalize over the token axis for q and k, fused across all heads
    # (single lane reduction over the (2C, N) slab), rsqrt on the EUP.
    # x / max(||x||, eps) == x * rsqrt(max(sum(x^2), eps^2)).
    # The per-head temperature is pre-folded into scale_ref (q rows only).
    qk = qkvT[: 2 * C]                                                   # (2C, N)
    ssq = jnp.sum(qk * qk, axis=-1, keepdims=True)                       # (2C, 1)
    inv = lax.rsqrt(jnp.maximum(ssq, EPS * EPS)) * scale_ref[...]        # (2C, 1)
    qk_n = (qk * inv).astype(jnp.bfloat16)                               # (2C, N)

    # Cheap sublane slices + leading-dim reshapes (no lane crossing).
    qn = qk_n[:C].reshape(H, Dh, N)                                      # (H, Dh, N)
    kn = qk_n[C:].reshape(H, Dh, N)
    v = qkvT[2 * C:].astype(jnp.bfloat16).reshape(H, Dh, N)

    # Cross-covariance per head, batched over H: attn[h,i,j] = sum_n qn*kn.
    attn = lax.dot_general(qn, kn, (((2,), (2,)), ((0,), (0,))),
                           preferred_element_type=jnp.float32)           # (H, Dh, Dh)

    # Softmax over the last axis; the division goes to the EUP reciprocal slot.
    attn = attn - jnp.max(attn, axis=-1, keepdims=True)
    e = jnp.exp(attn)
    attn = (e * pl.reciprocal(jnp.sum(e, axis=-1, keepdims=True), approx=True)
            ).astype(jnp.bfloat16)
    # TODO(synk): attn_drop / proj_drop are identity at eval (p=0.0) and omitted.

    # out^T[h] = attn[h] @ v^T[h] -> (H, Dh, N); fold heads back to (C, N).
    outT = lax.dot_general(attn, v, (((2,), (1,)), ((0,), (0,))),
                           preferred_element_type=jnp.float32)           # (H, Dh, N)
    outT = outT.astype(jnp.bfloat16).reshape(C, N)                       # (C, N)

    # Output projection fused over all heads: y[n,o] = sum_c out^T[c,n] * Wp[c,o].
    # Output is lane-dense along C_out.
    y = lax.dot_general(outT, wp_ref[...], (((0,), (0,)), ((), ())),
                        preferred_element_type=jnp.float32)              # (N, C_out)
    o_ref[0] = (y + bp_ref[...]).astype(o_ref.dtype)


def xca_forward(x, wqkv, wproj, bproj, temperature):
    """x: (B,N,C) f32; wqkv: (C,3C) = qkv.weight.T; wproj: (C,C_out) = proj.weight.T;
    bproj: (C_out,); temperature: (H,1,1) like the PyTorch parameter."""
    B, N, C = x.shape
    C_out = wproj.shape[1]
    H = temperature.shape[0]
    assert C % H == 0
    Dh = C // H

    # Wrapper-side layout plumbing (free): head-major transposed weights in bf16,
    # per-row temperature folded into the q-normalisation scale.
    w3 = jnp.transpose(wqkv).astype(jnp.bfloat16)                 # (3C, C)
    wp = wproj.astype(jnp.bfloat16)                               # (C, C_out)
    bp = bproj.reshape(1, C_out).astype(jnp.float32)              # (1, C_out)
    t_rows = jnp.repeat(temperature.reshape(H).astype(jnp.float32), Dh)   # (C,)
    scale = jnp.concatenate([t_rows, jnp.ones((C,), jnp.float32)]
                            ).reshape(2 * C, 1)                   # (2C, 1)
    x_b = x.astype(jnp.bfloat16)

    # Advisory cost estimate for XLA's scheduler.
    flops = B * (2 * N * C * 3 * C          # qkv projection
                 + 2 * H * Dh * Dh * N      # Gram
                 + 2 * H * Dh * Dh * N      # attn @ v
                 + 2 * N * C * C_out)       # output projection
    transcendentals = B * (H * Dh * Dh + 2 * C)   # exp + rsqrt
    bytes_accessed = (x_b.size * 2 + w3.size * 2 + wp.size * 2
                      + scale.size * 4 + bp.size * 4 + B * N * C_out * 4)

    kernel = functools.partial(xca_kernel, num_heads=H)
    return pl.pallas_call(
        kernel,
        out_shape=jax.ShapeDtypeStruct((B, N, C_out), x.dtype),
        grid_spec=pltpu.PrefetchScalarGridSpec(
            num_scalar_prefetch=0,
            grid=(B,),
            in_specs=[
                pl.BlockSpec((1, N, C), lambda b: (b, 0, 0)),      # x (per batch)
                pl.BlockSpec((3 * C, C), lambda b: (0, 0)),        # qkv weight (invariant)
                pl.BlockSpec((2 * C, 1), lambda b: (0, 0)),        # norm scale (invariant)
                pl.BlockSpec((C, C_out), lambda b: (0, 0)),        # proj weight (invariant)
                pl.BlockSpec((1, C_out), lambda b: (0, 0)),        # proj bias (invariant)
            ],
            out_specs=pl.BlockSpec((1, N, C_out), lambda b: (b, 0, 0)),
        ),
        compiler_params=pltpu.CompilerParams(
            dimension_semantics=("parallel",),
            vmem_limit_bytes=32 * 1024 * 1024),
        cost_estimate=pl.CostEstimate(flops=flops,
                                      transcendentals=transcendentals,
                                      bytes_accessed=bytes_accessed),
    )(x_b, w3, scale, wp, bp)


def xca_reference(x, wqkv, wproj, bproj, temperature):
    """Pure-JAX f32 reference mirroring the PyTorch forward exactly."""
    B, N, C = x.shape
    H = temperature.shape[0]
    Dh = C // H
    qkv = x @ wqkv                                                # (B, N, 3C)
    qkv = qkv.reshape(B, N, 3, H, Dh).transpose(2, 0, 3, 1, 4)    # (3, B, H, N, Dh)
    q, k, v = qkv[0], qkv[1], qkv[2]
    q = jnp.swapaxes(q, -2, -1)                                   # (B, H, Dh, N)
    k = jnp.swapaxes(k, -2, -1)
    v = jnp.swapaxes(v, -2, -1)
    q = q / jnp.maximum(jnp.linalg.norm(q, axis=-1, keepdims=True), EPS)
    k = k / jnp.maximum(jnp.linalg.norm(k, axis=-1, keepdims=True), EPS)
    attn = (q @ jnp.swapaxes(k, -2, -1)) * temperature.reshape(1, H, 1, 1)
    attn = jax.nn.softmax(attn, axis=-1)
    out = (attn @ v).transpose(0, 3, 1, 2).reshape(B, N, C)
    return out @ wproj + bproj.reshape(1, -1)


if __name__ == "__main__":
    B, N, C = 2, 32, 64
    C_out = C
    H = 4

    key = jax.random.PRNGKey(0)
    kx, kqkv, kproj, kb = jax.random.split(key, 4)
    x = jax.random.normal(kx, (B, N, C), dtype=jnp.float32)
    wqkv = jax.random.normal(kqkv, (C, 3 * C), dtype=jnp.float32) * 0.1
    wproj = jax.random.normal(kproj, (C, C_out), dtype=jnp.float32) * 0.1
    bproj = jax.random.normal(kb, (C_out,), dtype=jnp.float32) * 0.01
    # Module default is ones; perturb so the per-head scaling is exercised.
    temperature = (1.0 + 0.25 * jnp.arange(H, dtype=jnp.float32)).reshape(H, 1, 1)

    out = jax.block_until_ready(xca_forward(x, wqkv, wproj, bproj, temperature))

    # Compare against an f32 reference evaluated on the same bf16-rounded
    # operands the kernel consumes (residual diff = intermediate bf16 casts at
    # MXU boundaries + approx reciprocal, well under the tolerance below).
    x_r = x.astype(jnp.bfloat16).astype(jnp.float32)
    wqkv_r = wqkv.astype(jnp.bfloat16).astype(jnp.float32)
    wproj_r = wproj.astype(jnp.bfloat16).astype(jnp.float32)
    ref = xca_reference(x_r, wqkv_r, wproj_r, bproj, temperature)

    assert out.shape == (B, N, C_out)
    max_diff = jnp.max(jnp.abs(out - ref))
    assert jnp.allclose(out, ref, atol=2e-2, rtol=2e-2), (
        f"mismatch vs reference: max abs diff = {max_diff}")
    print("KERNEL_OK")
</pallas_src>

<mosaic_0001>
module attributes {stable_mosaic.version = 11 : i64} {
  func.func @xca_kernel(%arg0: i32, %arg1: memref<1x32x64xbf16, #tpu.memory_space<vmem>>, %arg2: memref<192x64xbf16, #tpu.memory_space<vmem>>, %arg3: memref<128x1xf32, #tpu.memory_space<vmem>>, %arg4: memref<64x64xbf16, #tpu.memory_space<vmem>>, %arg5: memref<1x64xf32, #tpu.memory_space<vmem>>, %arg6: memref<1x32x64xf32, #tpu.memory_space<vmem>>) attributes {dimension_semantics = [#tpu.dimension_semantics<parallel>], iteration_bounds = array<i64: 2>, scalar_prefetch = 0 : i64, scratch_operands = 0 : i64, tpu.core_type = #tpu.core_type<tc>, window_params = [{transform_indices = @transform_0, window_bounds = array<i64: 1, 32, 64>}, {pipeline_mode = #tpu.pipeline_mode<synchronous>, transform_indices = @transform_1, window_bounds = array<i64: 192, 64>}, {pipeline_mode = #tpu.pipeline_mode<synchronous>, transform_indices = @transform_2, window_bounds = array<i64: 128, 1>}, {pipeline_mode = #tpu.pipeline_mode<synchronous>, transform_indices = @transform_3, window_bounds = array<i64: 64, 64>}, {pipeline_mode = #tpu.pipeline_mode<synchronous>, transform_indices = @transform_4, window_bounds = array<i64: 1, 64>}, {transform_indices = @transform_5, window_bounds = array<i64: 1, 32, 64>}]} {
    %c0 = arith.constant 0 : index
    %c0_0 = arith.constant 0 : index
    %c0_1 = arith.constant 0 : index
    %0 = vector.load %arg1[%c0, %c0_0, %c0_1] : memref<1x32x64xbf16, #tpu.memory_space<vmem>>, vector<1x32x64xbf16>
    %1 = vector.shape_cast %0 : vector<1x32x64xbf16> to vector<32x64xbf16>
    %c0_2 = arith.constant 0 : index
    %c0_3 = arith.constant 0 : index
    %2 = vector.load %arg2[%c0_2, %c0_3] : memref<192x64xbf16, #tpu.memory_space<vmem>>, vector<192x64xbf16>
    %cst = arith.constant dense<0.000000e+00> : vector<192x32xf32>
    %3 = tpu.matmul %2, %1, %cst {dimension_numbers = #tpu.dot_dimension_numbers<[1], [1], [0], [0], [0, 0, 1, 0], [], []>} : vector<192x64xbf16>, vector<32x64xbf16>, vector<192x32xf32> -> vector<192x32xf32>
    %4 = vector.extract_strided_slice %3 {offsets = [0, 0], sizes = [128, 32], strides = [1, 1]} : vector<192x32xf32> to vector<128x32xf32>
    %5 = arith.mulf %4, %4 : vector<128x32xf32>
    %cst_4 = arith.constant dense<0.000000e+00> : vector<128xf32>
    %6 = vector.multi_reduction <add>, %5, %cst_4 [1] : vector<128x32xf32> to vector<128xf32>
    %7 = vector.shape_cast %6 : vector<128xf32> to vector<128x1xf32>
    %cst_5 = arith.constant 1.000000e-24 : f32
    %8 = vector.broadcast %cst_5 : f32 to vector<128x1xf32>
    %9 = arith.maximumf %7, %8 : vector<128x1xf32>
    %10 = math.rsqrt %9 : vector<128x1xf32>
    %c0_6 = arith.constant 0 : index
    %c0_7 = arith.constant 0 : index
    %11 = vector.load %arg3[%c0_6, %c0_7] : memref<128x1xf32, #tpu.memory_space<vmem>>, vector<128x1xf32>
    %12 = arith.mulf %10, %11 : vector<128x1xf32>
    %13 = vector.broadcast %12 : vector<128x1xf32> to vector<128x32xf32>
    %14 = arith.mulf %4, %13 : vector<128x32xf32>
    %15 = arith.truncf %14 : vector<128x32xf32> to vector<128x32xbf16>
    %16 = vector.extract_strided_slice %15 {offsets = [0, 0], sizes = [64, 32], strides = [1, 1]} : vector<128x32xbf16> to vector<64x32xbf16>
    %17 = vector.shape_cast %16 : vector<64x32xbf16> to vector<4x16x32xbf16>
    %18 = vector.extract_strided_slice %15 {offsets = [64, 0], sizes = [64, 32], strides = [1, 1]} : vector<128x32xbf16> to vector<64x32xbf16>
    %19 = vector.shape_cast %18 : vector<64x32xbf16> to vector<4x16x32xbf16>
    %20 = vector.extract_strided_slice %3 {offsets = [128, 0], sizes = [64, 32], strides = [1, 1]} : vector<192x32xf32> to vector<64x32xf32>
    %21 = arith.truncf %20 : vector<64x32xf32> to vector<64x32xbf16>
    %22 = vector.shape_cast %21 : vector<64x32xbf16> to vector<4x16x32xbf16>
    %cst_8 = arith.constant dense<0.000000e+00> : vector<4x16x16xf32>
    %23 = tpu.matmul %17, %19, %cst_8 {dimension_numbers = #tpu.dot_dimension_numbers<[2], [2], [1], [1], [0, 0, 0, 1, 1, 1], [0], [0]>} : vector<4x16x32xbf16>, vector<4x16x32xbf16>, vector<4x16x16xf32> -> vector<4x16x16xf32>
    %cst_9 = arith.constant dense<0xFF800000> : vector<4x16xf32>
    %24 = vector.multi_reduction <maximumf>, %23, %cst_9 [2] : vector<4x16x16xf32> to vector<4x16xf32>
    %25 = vector.shape_cast %24 : vector<4x16xf32> to vector<4x16x1xf32>
    %26 = vector.broadcast %25 : vector<4x16x1xf32> to vector<4x16x16xf32>
    %27 = arith.subf %23, %26 : vector<4x16x16xf32>
    %28 = math.exp %27 : vector<4x16x16xf32>
    %cst_10 = arith.constant dense<0.000000e+00> : vector<4x16xf32>
    %29 = vector.multi_reduction <add>, %28, %cst_10 [2] : vector<4x16x16xf32> to vector<4x16xf32>
    %30 = vector.shape_cast %29 : vector<4x16xf32> to vector<4x16x1xf32>
    %31 = tpu.reciprocal %30 {approx = true} : vector<4x16x1xf32> -> vector<4x16x1xf32>
    %32 = vector.broadcast %31 : vector<4x16x1xf32> to vector<4x16x16xf32>
    %33 = arith.mulf %28, %32 : vector<4x16x16xf32>
    %34 = arith.truncf %33 : vector<4x16x16xf32> to vector<4x16x16xbf16>
    %cst_11 = arith.constant dense<0.000000e+00> : vector<4x16x32xf32>
    %35 = tpu.matmul %34, %22, %cst_11 {dimension_numbers = #tpu.dot_dimension_numbers<[2], [1], [1], [2], [0, 0, 0, 1, 1, 2], [0], [0]>} : vector<4x16x16xbf16>, vector<4x16x32xbf16>, vector<4x16x32xf32> -> vector<4x16x32xf32>
    %36 = arith.truncf %35 : vector<4x16x32xf32> to vector<4x16x32xbf16>
    %37 = vector.shape_cast %36 : vector<4x16x32xbf16> to vector<64x32xbf16>
    %c0_12 = arith.constant 0 : index
    %c0_13 = arith.constant 0 : index
    %38 = vector.load %arg4[%c0_12, %c0_13] : memref<64x64xbf16, #tpu.memory_space<vmem>>, vector<64x64xbf16>
    %cst_14 = arith.constant dense<0.000000e+00> : vector<32x64xf32>
    %39 = tpu.matmul %37, %38, %cst_14 {dimension_numbers = #tpu.dot_dimension_numbers<[0], [0], [1], [1], [0, 1, 1, 1], [], []>} : vector<64x32xbf16>, vector<64x64xbf16>, vector<32x64xf32> -> vector<32x64xf32>
    %c0_15 = arith.constant 0 : index
    %c0_16 = arith.constant 0 : index
    %40 = vector.load %arg5[%c0_15, %c0_16] : memref<1x64xf32, #tpu.memory_space<vmem>>, vector<1x64xf32>
    %41 = vector.broadcast %40 : vector<1x64xf32> to vector<32x64xf32>
    %42 = arith.addf %39, %41 : vector<32x64xf32>
    %c0_17 = arith.constant 0 : index
    %c0_18 = arith.constant 0 : index
    %c0_19 = arith.constant 0 : index
    %43 = vector.load %arg6[%c0_17, %c0_18, %c0_19] : memref<1x32x64xf32, #tpu.memory_space<vmem>>, vector<1x32x64xf32>
    %44 = vector.shape_cast %43 : vector<1x32x64xf32> to vector<32x64xf32>
    %45 = vector.shape_cast %42 : vector<32x64xf32> to vector<1x32x64xf32>
    tpu.vector_store %arg6[%c0_17, %c0_18, %c0_19], %45 {strides = array<i32>} : memref<1x32x64xf32, #tpu.memory_space<vmem>>, vector<1x32x64xf32>,
    return
  }
  func.func @transform_0(%arg0: i32) -> (i32, i32, i32) {
    %c0_i32 = arith.constant 0 : i32
    %c0_i32_0 = arith.constant 0 : i32
    %c0_i32_1 = arith.constant 0 : i32
    return %arg0, %c0_i32, %c0_i32_0 : i32, i32, i32
  }
  func.func @transform_1(%arg0: i32) -> (i32, i32) {
    %c0_i32 = arith.constant 0 : i32
    %c0_i32_0 = arith.constant 0 : i32
    %c0_i32_1 = arith.constant 0 : i32
    return %c0_i32, %c0_i32_0 : i32, i32
  }
  func.func @transform_2(%arg0: i32) -> (i32, i32) {
    %c0_i32 = arith.constant 0 : i32
    %c0_i32_0 = arith.constant 0 : i32
    %c0_i32_1 = arith.constant 0 : i32
    return %c0_i32, %c0_i32_0 : i32, i32
  }
  func.func @transform_3(%arg0: i32) -> (i32, i32) {
    %c0_i32 = arith.constant 0 : i32
    %c0_i32_0 = arith.constant 0 : i32
    %c0_i32_1 = arith.constant 0 : i32
    return %c0_i32, %c0_i32_0 : i32, i32
  }
  func.func @transform_4(%arg0: i32) -> (i32, i32) {
    %c0_i32 = arith.constant 0 : i32
    %c0_i32_0 = arith.constant 0 : i32
    %c0_i32_1 = arith.constant 0 : i32
    return %c0_i32, %c0_i32_0 : i32, i32
  }
  func.func @transform_5(%arg0: i32) -> (i32, i32, i32) {
    %c0_i32 = arith.constant 0 : i32
    %c0_i32_0 = arith.constant 0 : i32
    %c0_i32_1 = arith.constant 0 : i32
    return %arg0, %c0_i32, %c0_i32_0 : i32, i32, i32
  }
}

</mosaic_0001>

<bundles_post_ra>
// kernel: tpu_custom_call.1
= control target key start
LH: loop header
LB: loop body
LE: loop exit
PB: predicated region body
PF: predicated region fallthrough
CT: control target
= control target key end

     0   :  { %10 = vsyncpa [#allocation3], 0  ;;  %s2172_s0 = inlined_call_operand.vmem [shape: bf16[2,32,64], index: 0, kind: input, shape index: {}]   ;;  %s2173_s1 = inlined_call_operand.vmem [shape: bf16[192,64], index: 1, kind: input, shape index: {}]   ;;  %s2174_s2 = inlined_call_operand.vmem [shape: f32[128,1], index: 2, kind: input, shape index: {}]   ;;  %s2175_s3 = inlined_call_operand.vmem [shape: bf16[64,64], index: 3, kind: input, shape index: {}]   ;;  %s2176_s4 = inlined_call_operand.vmem [shape: f32[1,64], index: 4, kind: input, shape index: {}]   ;;  %s2177_s5 = inlined_call_operand.hbm [shape: f32[2,32,64], index: 5, kind: output, shape index: {}]  }
   0x1   :  { %12 = vsyncpa [#allocation3 + $0x1], 0  ;;  %s1789_s18 = smov 0   ;;  %s1791_s19 = smov 0  }
   0x2   :  { %s1793_s20 = smov 0   ;;  %s1795_s21 = smov 0  }
   0x3 LB: > { %s1810_s22 = sadd.s32 4294967295, %s1751_s21   ;;  %s1382_s23 = sadd.s32 4294967294, %s1751_s21   ;;  %s1751_s21 = sphi %s1795_s21, %s2183_s21   ;;  %s1747_s20 = sphi %s1793_s20, %s2182_s20   ;;  %s1743_s19 = sphi %s1791_s19, %s2181_s19   ;;  %s1739_s18 = sphi %s1789_s18, %s2180_s18  }
   0x4   : > { %s1814_s24 = sadd.s32 1, %s1751_s21   ;;  %s135_s25 = sadd.s32 1, %s1747_s20 }
   0x5   : > { %s132_s26 = ssub.s32 %s1751_s21, %s1814_s24  ;;  %p145_p0 = scmp.ne.s32.totalorder %s1747_s20, %s1743_s19 }
   0x6   : > { %p133_p1 = scmp.eq.s32.totalorder %s132_s26, 0  ;;  %p146_p2 = scmp.eq.s32.totalorder %s1810_s22, 1 }
   0x7   : > { %p151_p3 = scmp.ne.s32.totalorder %s1743_s19, %s1739_s18  ;;  %p152_p4 = scmp.eq.s32.totalorder %s1382_s23, 1 }
   0x8   : > { %s1825_s27 = scalar_select %p133_p1, %s1747_s20, %s135_s25  }
   0x9   : > { %p1827_p5 = por %p146_p2, %p145_p0  ;;  %p1831_p6 = por %p152_p4, %p151_p3 }
   0xa   : > { %p1385_p7 = scmp.ge.s32.totalorder %s1751_s21, 1  ;;  %p190_p8 = scmp.lt.s32.totalorder %s1751_s21, 3 }
   0xc   : > { %p191_p9 = pnand %p1385_p7, %p190_p8 }
   0xd   : > { %p218_p10 = scmp.lt.s32.totalorder (!%p191_p9), %s1810_s22, 1  ;;  %s215_s10 = sand.u32 (!%p191_p9), 1, %s1743_s19  }
   0xe   : > { %194 = sbr.rel (%p191_p9) target bundleno = 1598 (0x63e), region = 40  ;;  %s1436_s16 = sshll.u32 (!%p191_p9), %s1810_s22, 9 }
   0xf   : > { %s2129_s25 = scalar_lea.hbm (!%p191_p9), %s2177_s5, %s1436_s16  ;;  %s1756_s30 = smov (!%p191_p9), [#allocation2]  }
  0x10   : > { %s1695_s6 = sshll.u32 (!%p191_p9), %s1756_s30, 4  ;;  %s1696_s6 = int_to_ptr.vmem [resolvable:$false] %s1695_s6 }
  0x13   : > { %v1611_v0 = vld [vmem:[%s2173_s1] sm:$0xff]   ;;  %s219_s7 = scalar_select %p218_p10, %s1810_s22, 1  ;;  %vm322_vm0 = vcmask 523264   ;;  %v1612_v5 = vld [vmem:[%s2173_s1 + $0x8] sm:$0xff]   ;;  %v1613_v6 = vld [vmem:[%s2173_s1 + $0x10] sm:$0xff]   ;;  %vm510_vm1 = vcmask 261120  }
  0x14   : > { %1477 = vmatprep.mubr.msk.bf16.mxu0 %vm322_vm0, %v1611_v0  ;;  %v1614_v7 = vld [vmem:[%s2173_s1 + $0x18] sm:$0xff]   ;;  %v1615_v8 = vld [vmem:[%s2173_s1 + $0x20] sm:$0xff]   ;;  %v1616_v9 = vld [vmem:[%s2173_s1 + $0x28] sm:$0xff]   ;;  %v1753_v48 = vmov 0   ;;  %vm1755_vm2 = vmmov 0   ;;  %vm919_vm3 = vcmask 130048  }
  0x15   : > { %s1435_s8 = sshll.u32 %s219_s7, 4  ;;  %v1617_v10 = vld [vmem:[%s2173_s1 + $0x30] sm:$0xff]   ;;  %v1618_v11 = vld [vmem:[%s2173_s1 + $0x38] sm:$0xff]   ;;  %1608 = vset.pattern.permute.xlu1 %v1753_v48  ;;  %1607 = vset.pattern.permute.xlu0 %v1753_v48  ;;  %s2132_s22 = scalar_lea.sflag [#allocation3], %s215_s10 }
  0x16   : > { %s222_s11 = scalar_lea.vmem %s2172_s0, %s1435_s8  ;;  %s1697_s7 = scalar_lea.vmem %s1696_s6, 1024 }
  0x17   : > { %v1609_v1 = vld [vmem:[%s222_s11 + $0x8] sm:$0xff]   ;;  %v1610_v2 = vld [vmem:[%s222_s11] sm:$0xff]   ;;  %s1386_s11 = sshll.u32 %s215_s10, 5 }
  0x18   : > { %1561 = vmatprep.subr.msk.bf16.mxu0 %vm322_vm0, %v1609_v1  ;;  %v363_v3 = vsel %vm322_vm0, %v1609_v1, 0  ;;  %v360_v4 = vsel %vm322_vm0, %v1610_v2, 0  ;;  %v591_v1 = vld [vmem:[%s2174_s2] sm:$0xff]  ;;  %s217_s14 = scalar_lea.vmem [#allocation2], %s1386_s11 }
  0x19   : > { %1474 = vmatpush3.bf16.xpose.msra.mxu0 %v363_v3  ;;  %s1320_s15 = sshll.u32 %s217_s14, 4  ;;  %s2123_s15 = int_to_ptr.vmem [resolvable:$true] %s1320_s15 }
  0x1a   : > { %1562 = vmatprep.subr.msk.bf16.mxu0 %vm322_vm0, %v1610_v2  ;;  %s1691_s26 = scalar_lea.vmem %s2123_s15, 512  ;;  %p1698_p0 = scmp.lt.s32.totalorder %s2123_s15, %s1696_s6 }
  0x1b   : > { %p1692_p11 = scmp.ne.s32.totalorder %s2123_s15, %s1691_s26  ;;  %p1699_p1 = scmp.lt.s32.totalorder %s1697_s7, %s1691_s26 }
  0x1d   : > { %p1693_p12 = pnand %p1692_p11, %p1827_p5  ;;  %p1700_p2 = por %p1699_p1, %p1698_p0 }
  0x1f   : > { %p1694_p13 = pneg %p1693_p12 }
  0x21   : > { %1476 = vmatpush3.bf16.xpose.msra.mxu0 %v360_v4  ;;  %p1701_p3 = pnand %p1700_p2, %p1694_p13 }
  0x28   : > { %1478 = vmatmul.mubr.msk.bf16.vlgmr.msra.gmra.mxu0 %vm322_vm0, %v1612_v5 }
  0x29   : > { %1481 = vmatprep.mubr.msk.bf16.mxu0 %vm322_vm0, %v1613_v6 }
  0x30   : > { %1482 = vmatmul.mubr.msk.bf16.gmra.mxu0 %vm322_vm0, %v1614_v7  ;;  %v592_v7 = vld [vmem:[%s2174_s2 + $0x8] sm:$0xff] }
  0x31   : > { %1485 = vmatprep.mubr.msk.bf16.mxu0 %vm322_vm0, %v1615_v8 }
  0x38   : > { %1486 = vmatmul.mubr.msk.bf16.gmra.mxu0 %vm322_vm0, %v1616_v9 }
  0x39   : > { %1489 = vmatprep.mubr.msk.bf16.mxu0 %vm322_vm0, %v1617_v10 }
  0x40   : > { %1490 = vmatmul.mubr.msk.bf16.gmra.mxu0 %vm322_vm0, %v1618_v11 }
  0xe8   : > { %v1878_v12 = vpop.f32.mrf.mxu0 }
  0xe9   : > { %v496_v40 = vmul.f32 %v1878_v12, %v1878_v12 }
  0xea   : > { %v1880_v13 = vpop.f32.mrf.mxu0 }
  0xeb   : > { %v494_v14 = vmul.f32 %v1880_v13, %v1880_v13  ;;  %v517_v46 = vsel %vm510_vm1, %v496_v40, 0.0 }
  0xec   : > { %v1884_v15 = vpop.f32.mrf.mxu0 }
  0xed   : > { %v511_v16 = vsel %vm510_vm1, %v494_v14, 0.0  ;;  %v497_v31 = vmul.f32 %v1884_v15, %v1884_v15 }
  0xee   : > { %512 = vadd.xlane.f32.xlu1 %v511_v16  ;;  %v1887_v17 = vpop.f32.mrf.mxu0 }
  0xef   : > { %v495_v18 = vmul.f32 %v1887_v17, %v1887_v17  ;;  %v520_v38 = vsel %vm510_vm1, %v497_v31, 0.0  ;;  %v599_v31 = vld [vmem:[%s2174_s2 + $0x40] sm:$0xff] }
  0xf0   : > { %v1891_v19 = vpop.f32.mrf.mxu0 }
  0xf1   : > { %v514_v20 = vsel %vm510_vm1, %v495_v18, 0.0  ;;  %v500_v57 = vmul.f32 %v1891_v19, %v1891_v19 }
  0xf2   : > { %515 = vadd.xlane.f32.xlu1 %v514_v20  ;;  %v1894_v21 = vpop.f32.mrf.mxu0 }
  0xf3   : > { %v498_v51 = vmul.f32 %v1894_v21, %v1894_v21  ;;  %v529_v60 = vsel %vm510_vm1, %v500_v57, 0.0 }
  0xf4   : > { %v1896_v22 = vpop.f32.mrf.mxu0 }
  0xf5   : > { %v501_v54 = vmul.f32 %v1896_v22, %v1896_v22  ;;  %v523_v56 = vsel %vm510_vm1, %v498_v51, 0.0 }
  0xf6   : > { %v1898_v23 = vpop.f32.mrf.mxu0 }
  0xf7   : > { %v499_v45 = vmul.f32 %v1898_v23, %v1898_v23  ;;  %v532_v59 = vsel %vm510_vm1, %v501_v54, 0.0  ;;  %v604_v54 = vld [vmem:[%s2174_s2 + $0x68] sm:$0xff] }
  0xf8   : > { %v1900_v24 = vpop.f32.mrf.mxu0 }
  0xf9   : > { %v504_v35 = vmul.f32 %v1900_v24, %v1900_v24  ;;  %v526_v52 = vsel %vm510_vm1, %v499_v45, 0.0 }
  0xfa   : > { %v1902_v25 = vpop.f32.mrf.mxu0 }
  0xfb   : > { %v502_v26 = vmul.f32 %v1902_v25, %v1902_v25  ;;  %v541_v41 = vsel %vm510_vm1, %v504_v35, 0.0 }
  0xfc   : > { %v1906_v27 = vpop.f32.mrf.mxu0 }
  0xfd   : > { %v505_v28 = vmul.f32 %v1906_v27, %v1906_v27  ;;  %v535_v29 = vsel %vm510_vm1, %v502_v26, 0.0 }
  0xfe   : > { %536 = vadd.xlane.f32.xlu0 %v535_v29  ;;  %v1911_v30 = vpop.f32.mrf.mxu0 }
  0xff   : > { %v503_v32 = vmul.f32 %v1911_v30, %v1911_v30  ;;  %v544_v33 = vsel %vm510_vm1, %v505_v28, 0.0 }
 0x100   : > { %545 = vadd.xlane.f32.xlu1 %v544_v33  ;;  %v1918_v34 = vpop.f32.mrf.mxu0 }
 0x101   : > { %v538_v36 = vsel %vm510_vm1, %v503_v32, 0.0  ;;  %v508_v55 = vmul.f32 %v1918_v34, %v1918_v34 }
 0x102   : > { %539 = vadd.xlane.f32.xlu0 %v538_v36  ;;  %v1923_v37 = vpop.f32.mrf.mxu0 }
 0x103   : > { %v506_v43 = vmul.f32 %v1923_v37, %v1923_v37  ;;  %v553_v58 = vsel %vm510_vm1, %v508_v55, 0.0 }
 0x104   : > { %521 = vadd.xlane.f32.xlu1 %v520_v38  ;;  %v1926_v39 = vpop.f32.mrf.mxu0 }
 0x105   : > { %v509_v49 = vmul.f32 %v1926_v39, %v1926_v39  ;;  %v547_v50 = vsel %vm510_vm1, %v506_v43, 0.0 }
 0x106   : > { %542 = vadd.xlane.f32.xlu0 %v541_v41  ;;  %v1931_v42 = vpop.f32.mrf.mxu0 }
 0x107   : > { %v507_v44 = vmul.f32 %v1931_v42, %v1931_v42  ;;  %v556_v53 = vsel %vm510_vm1, %v509_v49, 0.0 }
 0x109   : > { %v550_v47 = vsel %vm510_vm1, %v507_v44, 0.0 }
 0x10a   : > { %518 = vadd.xlane.f32.xlu0 %v517_v46  ;;  %551 = vadd.xlane.f32.xlu1 %v550_v47  ;;  %v601_v46 = vld [vmem:[%s2174_s2 + $0x50] sm:$0xff] }
 0x10e   : > { %548 = vadd.xlane.f32.xlu0 %v547_v50  ;;  %527 = vadd.xlane.f32.xlu1 %v526_v52 }
 0x112   : > { %524 = vadd.xlane.f32.xlu0 %v523_v56  ;;  %557 = vadd.xlane.f32.xlu1 %v556_v53  ;;  %v600_v53 = vld [vmem:[%s2174_s2 + $0x48] sm:$0xff] }
 0x116   : > { %554 = vadd.xlane.f32.xlu0 %v553_v58  ;;  %533 = vadd.xlane.f32.xlu1 %v532_v59 }
 0x11a   : > { %530 = vadd.xlane.f32.xlu0 %v529_v60 }
 0x177   : > { %v513_v61 = vpop.xlane.xlu1 %512 }
 0x178   : > { %v559_v62 = vmax.f32 %v513_v61, 1e-24  ;;  %v602_v61 = vld [vmem:[%s2174_s2 + $0x58] sm:$0xff] }
 0x17a   : > { %1627 = vrsqrt.f32 %v559_v62  ;;  %v596_v62 = vld [vmem:[%s2174_s2 + $0x28] sm:$0xff] }
 0x17b   : > { %v516_v63 = vpop.xlane.xlu1 %515 }
 0x17c   : > { %v560_v0 = vmax.f32 %v516_v63, 1e-24  ;;  %v1754_v63 = vmov 0.0  }
 0x17d   : > { %1501 = vmatprep.subr.bf16.mxu1 %v1754_v63  ;;  %1543 = vmatprep.subr.bf16.mxu0 %v1754_v63 }
 0x17e   : > { %1629 = vrsqrt.f32 %v560_v0  ;;  %1503 = vmatprep.mubr.msk.bf16.mxu1 %vm1755_vm2, %v1754_v63 }
 0x187   : > { %v1628_v2 = vpop.eup %1627  ;;  %v537_v3 = vpop.xlane.xlu0 %536 }
 0x188   : > { %v567_v4 = vmax.f32 %v537_v3, 1e-24  ;;  %v607_v5 = vmul.f32 %v1628_v2, %v591_v1 }
 0x189   : > { %v546_v6 = vpop.xlane.xlu1 %545 }
 0x18a   : > { %1631 = vrsqrt.f32 %v567_v4  ;;  %625 = vperm.xlu1 %1608, %v607_v5   ;;  %v570_v28 = vmax.f32 %v546_v6, 1e-24  ;;  %v593_v6 = vld [vmem:[%s2174_s2 + $0x10] sm:$0xff] }
 0x18b   : > { %v1630_v8 = vpop.eup %1629  ;;  %v540_v9 = vpop.xlane.xlu0 %539 }
 0x18c   : > { %v608_v10 = vmul.f32 %v1630_v8, %v592_v7  ;;  %v568_v16 = vmax.f32 %v540_v9, 1e-24  ;;  %v606_v7 = vld [vmem:[%s2174_s2 + $0x78] sm:$0xff] }
 0x18d   : > { %v522_v11 = vpop.xlane.xlu1 %521 }
 0x18e   : > { %630 = vperm.xlu1 %1608, %v608_v10   ;;  %v562_v43 = vmax.f32 %v522_v11, 1e-24 }
 0x18f   : > { %v543_v14 = vpop.xlane.xlu0 %542 }
 0x190   : > { %v569_v18 = vmax.f32 %v543_v14, 1e-24 }
 0x192   : > { %1633 = vrsqrt.f32 %v569_v18  ;;  %v598_v18 = vld [vmem:[%s2174_s2 + $0x38] sm:$0xff] }
 0x193   : > { %v519_v20 = vpop.xlane.xlu0 %518  ;;  %v552_v26 = vpop.xlane.xlu1 %551  ;;  %1635 = vrsqrt.f32 %v568_v16  ;;  %v594_v16 = vld [vmem:[%s2174_s2 + $0x18] sm:$0xff] }
 0x194   : > { %v572_v29 = vmax.f32 %v552_v26, 1e-24  ;;  %v561_v36 = vmax.f32 %v519_v20, 1e-24 }
 0x196   : > { %1637 = vrsqrt.f32 %v572_v29 }
 0x197   : > { %v1632_v32 = vpop.eup %1631  ;;  %v549_v33 = vpop.xlane.xlu0 %548  ;;  %1639 = vrsqrt.f32 %v570_v28 }
 0x198   : > { %v528_v35 = vpop.xlane.xlu1 %527  ;;  %v615_v40 = vmul.f32 %v1632_v32, %v599_v31  ;;  %v571_v49 = vmax.f32 %v549_v33, 1e-24  ;;  %v603_v31 = vld [vmem:[%s2174_s2 + $0x60] sm:$0xff] }
 0x199   : > { %v564_v38 = vmax.f32 %v528_v35, 1e-24  ;;  %v595_v35 = vld [vmem:[%s2174_s2 + $0x20] sm:$0xff] }
 0x19a   : > { %665 = vperm.xlu0 %1607, %v615_v40   ;;  %v605_v40 = vld [vmem:[%s2174_s2 + $0x70] sm:$0xff] }
 0x19b   : > { %1641 = vrsqrt.f32 %v564_v38  ;;  %v525_v45 = vpop.xlane.xlu0 %524 }
 0x19c   : > { %v558_v41 = vpop.xlane.xlu1 %557  ;;  %1643 = vrsqrt.f32 %v561_v36  ;;  %v563_v57 = vmax.f32 %v525_v45, 1e-24 }
 0x19d   : > { %v574_v44 = vmax.f32 %v558_v41, 1e-24 }
 0x19f   : > { %v1634_v47 = vpop.eup %1633  ;;  %1645 = vrsqrt.f32 %v574_v44  ;;  %v555_v55 = vpop.xlane.xlu0 %554  ;;  %v597_v44 = vld [vmem:[%s2174_s2 + $0x30] sm:$0xff] }
 0x1a0   : > { %v534_v48 = vpop.xlane.xlu1 %533  ;;  %1647 = vrsqrt.f32 %v562_v43  ;;  %v617_v51 = vmul.f32 %v1634_v47, %v601_v46  ;;  %v1636_v52 = vpop.eup %1635  ;;  %v573_v1 = vmax.f32 %v555_v55, 1e-24 }
 0x1a1   : > { %v566_v50 = vmax.f32 %v534_v48, 1e-24  ;;  %v616_v58 = vmul.f32 %v1636_v52, %v600_v53 }
 0x1a2   : > { %675 = vperm.xlu1 %1608, %v617_v51  }
 0x1a3   : > { %1649 = vrsqrt.f32 %v566_v50  ;;  %v1638_v56 = vpop.eup %1637  ;;  %v531_v4 = vpop.xlane.xlu0 %530 }
 0x1a4   : > { %1651 = vrsqrt.f32 %v571_v49  ;;  %v1640_v59 = vpop.eup %1639  ;;  %v620_v60 = vmul.f32 %v1638_v56, %v604_v54  ;;  %v565_v9 = vmax.f32 %v531_v4, 1e-24 }
 0x1a5   : > { %1653 = vrsqrt.f32 %v563_v57  ;;  %v618_v2 = vmul.f32 %v1640_v59, %v602_v61 }
 0x1a6   : > { %670 = vperm.xlu1 %1608, %v616_v58   ;;  %690 = vperm.xlu0 %1607, %v620_v60   ;;  %1655 = vrsqrt.f32 %v573_v1 }
 0x1a7   : > { %1657 = vrsqrt.f32 %v565_v9 }
 0x1a8   : > { %v1642_v0 = vpop.eup %1641 }
 0x1a9   : > { %v1644_v3 = vpop.eup %1643  ;;  %v612_v5 = vmul.f32 %v1642_v0, %v596_v62 }
 0x1aa   : > { %680 = vperm.xlu1 %1608, %v618_v2   ;;  %v609_v10 = vmul.f32 %v1644_v3, %v593_v6 }
 0x1ab   : > { %650 = vperm.xlu0 %1607, %v612_v5  }
 0x1ac   : > { %v1646_v8 = vpop.eup %1645 }
 0x1ad   : > { %v1648_v11 = vpop.eup %1647  ;;  %v622_v14 = vmul.f32 %v1646_v8, %v606_v7 }
 0x1ae   : > { %635 = vperm.xlu1 %1608, %v609_v10   ;;  %v610_v26 = vmul.f32 %v1648_v11, %v594_v16 }
 0x1af   : > { %700 = vperm.xlu0 %1607, %v622_v14  }
 0x1b0   : > { %v1650_v20 = vpop.eup %1649 }
 0x1b1   : > { %v1652_v28 = vpop.eup %1651  ;;  %v614_v29 = vmul.f32 %v1650_v20, %v598_v18  ;;  %v1620_v18 = vld [vmem:[%s2173_s1 + $0x48] sm:$0xff]  }
 0x1b2   : > { %640 = vperm.xlu1 %1608, %v610_v26   ;;  %v619_v32 = vmul.f32 %v1652_v28, %v603_v31  ;;  %v1654_v33 = vpop.eup %1653 }
 0x1b3   : > { %660 = vperm.xlu0 %1607, %v614_v29   ;;  %v611_v36 = vmul.f32 %v1654_v33, %v595_v35  ;;  %v1656_v38 = vpop.eup %1655 }
 0x1b4   : > { %v621_v41 = vmul.f32 %v1656_v38, %v605_v40  ;;  %v1658_v43 = vpop.eup %1657 }
 0x1b5   : > { %v613_v45 = vmul.f32 %v1658_v43, %v597_v44 }
 0x1b6   : > { %685 = vperm.xlu1 %1608, %v619_v32  }
 0x1ba   : > { %645 = vperm.xlu1 %1608, %v611_v36  }
 0x1be   : > { %695 = vperm.xlu1 %1608, %v621_v41  }
 0x1c2   : > { %655 = vperm.xlu1 %1608, %v613_v45  }
 0x205   : > { %v626_v46 = vpop.permute.xlu1 %625 }
 0x206   : > { %v703_v60 = vmul.f32 %v626_v46, %v1880_v13 }
 0x209   : > { %v631_v47 = vpop.permute.xlu1 %630 }
 0x20a   : > { %v704_v57 = vmul.f32 %v631_v47, %v1887_v17 }
 0x20c   : > { %v719_v62 = vpack.c.bf16 %v704_v57, %v703_v60 }
 0x215   : > { %v666_v49 = vpop.permute.xlu0 %665 }
 0x216   : > { %v711_v51 = vmul.f32 %v666_v49, %v1902_v25 }
 0x21d   : > { %v676_v48 = vpop.permute.xlu1 %675 }
 0x21e   : > { %v713_v58 = vmul.f32 %v1900_v24, %v676_v48 }
 0x221   : > { %v671_v50 = vpop.permute.xlu1 %670  ;;  %v691_v25 = vpop.permute.xlu0 %690 }
 0x222   : > { %v712_v52 = vmul.f32 %v671_v50, %v1911_v30  ;;  %v716_v13 = vmul.f32 %v691_v25, %v1931_v42 }
 0x224   : > { %v723_v53 = vpack.c.bf16 %v712_v52, %v711_v51 }
 0x225   : > { %v681_v54 = vpop.permute.xlu1 %680 }
 0x226   : > { %v714_v55 = vmul.f32 %v1906_v27, %v681_v54  ;;  %v735_v56 = vsel %vm510_vm1, %v723_v53, 0  ;;  %v651_v24 = vpop.permute.xlu0 %650 }
 0x227   : > { %1502 = vmatpush3.bf16.xpose.msra.mxu1 %v735_v56 }
 0x228   : > { %1507 = vmatprep.subr.bf16.mxu1 %v1754_v63  ;;  %v724_v61 = vpack.c.bf16 %v714_v55, %v713_v58 }
 0x229   : > { %v636_v59 = vpop.permute.xlu1 %635 }
 0x22a   : > { %v782_v27 = vsel %vm510_vm1, %v724_v61, 0  ;;  %v705_v1 = vmul.f32 %v1878_v12, %v636_v59  ;;  %v701_v7 = vpop.permute.xlu0 %700  ;;  %v708_v12 = vmul.f32 %v651_v24, %v1898_v23 }
 0x22d   : > { %v641_v30 = vpop.permute.xlu1 %640 }
 0x22e   : > { %1504 = vmatmul.mubr.msk.bf16.vlgmr.msra.gmra.mxu1 %vm510_vm1, %v719_v62  ;;  %v706_v17 = vmul.f32 %v1884_v15, %v641_v30  ;;  %v661_v16 = vpop.permute.xlu0 %660 }
 0x22f   : > { %1508 = vmatpush3.bf16.xpose.msra.mxu1 %v782_v27  ;;  %1509 = vmatprep.mubr.msk.bf16.mxu1 %vm1755_vm2, %v1754_v63  ;;  %v710_v23 = vmul.f32 %v1896_v22, %v661_v16  ;;  %v1622_v22 = vld [vmem:[%s2173_s1 + $0x58] sm:$0xff]  }
 0x230   : > { %1513 = vmatprep.subr.bf16.mxu1 %v1754_v63  ;;  %v720_v3 = vpack.c.bf16 %v706_v17, %v705_v1 }
 0x231   : > { %v686_v0 = vpop.permute.xlu1 %685 }
 0x232   : > { %v715_v2 = vmul.f32 %v686_v0, %v1923_v37  ;;  %v718_v37 = vmul.f32 %v1926_v39, %v701_v7 }
 0x234   : > { %v725_v4 = vpack.c.bf16 %v716_v13, %v715_v2 }
 0x235   : > { %v646_v5 = vpop.permute.xlu1 %645 }
 0x236   : > { %1510 = vmatmul.mubr.msk.bf16.vlgmr.msra.gmra.mxu1 %vm510_vm1, %v720_v3  ;;  %v829_v6 = vsel %vm510_vm1, %v725_v4, 0  ;;  %v707_v15 = vmul.f32 %v646_v5, %v1894_v21 }
 0x237   : > { %1514 = vmatpush3.bf16.xpose.msra.mxu1 %v829_v6  ;;  %1515 = vmatprep.mubr.msk.bf16.mxu1 %vm1755_vm2, %v1754_v63 }
 0x238   : > { %1519 = vmatprep.subr.bf16.mxu1 %v1754_v63  ;;  %v721_v9 = vpack.c.bf16 %v708_v12, %v707_v15 }
 0x239   : > { %v696_v42 = vpop.permute.xlu1 %695 }
 0x23a   : > { %v717_v8 = vmul.f32 %v1918_v34, %v696_v42  ;;  %v1619_v34 = vld [vmem:[%s2173_s1 + $0x40] sm:$0xff]  }
 0x23b   : > { %1493 = vmatprep.mubr.msk.bf16.mxu0 %vm322_vm0, %v1619_v34 }
 0x23c   : > { %v726_v10 = vpack.c.bf16 %v718_v37, %v717_v8  ;;  %1494 = vmatmul.mubr.msk.bf16.gmra.mxu0 %vm322_vm0, %v1620_v18 }
 0x23d   : > { %v656_v11 = vpop.permute.xlu1 %655 }
 0x23e   : > { %1516 = vmatmul.mubr.msk.bf16.vlgmr.msra.gmra.mxu1 %vm510_vm1, %v721_v9  ;;  %v876_v14 = vsel %vm510_vm1, %v726_v10, 0  ;;  %v709_v21 = vmul.f32 %v1891_v19, %v656_v11  ;;  %v1621_v19 = vld [vmem:[%s2173_s1 + $0x50] sm:$0xff]  }
 0x23f   : > { %1520 = vmatpush3.bf16.xpose.msra.mxu1 %v876_v14  ;;  %1521 = vmatprep.mubr.msk.bf16.mxu1 %vm1755_vm2, %v1754_v63 }
 0x240   : > { %1525 = vmatprep.subr.bf16.mxu1 %v1754_v63  ;;  %v722_v39 = vpack.c.bf16 %v710_v23, %v709_v21  ;;  %1497 = vmatprep.mubr.msk.bf16.mxu0 %vm322_vm0, %v1621_v19 }
 0x244   : > { %1498 = vmatmul.mubr.msk.bf16.gmra.mxu0 %vm322_vm0, %v1622_v22 }
 0x245   : > { %1545 = vmatprep.mubr.msk.bf16.mxu0 %vm1755_vm2, %v1754_v63 }
 0x246   : > { %1522 = vmatmul.mubr.msk.bf16.vlgmr.msra.gmra.mxu1 %vm510_vm1, %v722_v39 }
 0x247   : > { %1527 = vmatprep.mubr.msk.bf16.mxu1 %vm1755_vm2, %v1754_v63 }
 0x2ee   : > { %v771_v20 = vpop.f32.mrf.mxu1 }
 0x2ef   : > { %v920_v26 = vsel %vm919_vm3, %v771_v20, -inf }
 0x2f0   : > { %921 = vmax.xlane.f32.xlu1 %v920_v26  ;;  %v1505_v28 = vpop.f32.mrf.mxu1 }
 0x2f2   : > { %v774_v29 = vpop.f32.mrf.mxu1 }
 0x2f3   : > { %v923_v31 = vsel %vm919_vm3, %v774_v29, -inf }
 0x2f4   : > { %924 = vmax.xlane.f32.xlu0 %v923_v31  ;;  %v1506_v32 = vpop.f32.mrf.mxu1 }
 0x2f6   : > { %v818_v33 = vpop.f32.mrf.mxu1 }
 0x2f7   : > { %v926_v35 = vsel %vm919_vm3, %v818_v33, -inf }
 0x2f8   : > { %927 = vmax.xlane.f32.xlu0 %v926_v35  ;;  %v1511_v36 = vpop.f32.mrf.mxu1 }
 0x2fa   : > { %v821_v38 = vpop.f32.mrf.mxu1 }
 0x2fb   : > { %v929_v40 = vsel %vm919_vm3, %v821_v38, -inf }
 0x2fc   : > { %930 = vmax.xlane.f32.xlu1 %v929_v40  ;;  %v1512_v41 = vpop.f32.mrf.mxu1  ;;  %v2072_v55 = vpop.f32.mrf.mxu0 }
 0x2fe   : > { %v865_v43 = vpop.f32.mrf.mxu1  ;;  %v463_v56 = vpop.f32.mrf.mxu0 }
 0x2ff   : > { %v932_v44 = vsel %vm919_vm3, %v865_v43, -inf }
 0x300   : > { %933 = vmax.xlane.f32.xlu0 %v932_v44  ;;  %v1517_v45 = vpop.f32.mrf.mxu1  ;;  %v2074_v57 = vpop.f32.mrf.mxu0 }
 0x301   : > { %v728_v58 = vpack.c.bf16 %v2074_v57, %v2072_v55 }
 0x302   : > { %v868_v46 = vpop.f32.mrf.mxu1  ;;  %v466_v59 = vpop.f32.mrf.mxu0 }
 0x303   : > { %v935_v47 = vsel %vm919_vm3, %v868_v46, -inf  ;;  %v727_v60 = vpack.c.bf16 %v466_v59, %v463_v56 }
 0x304   : > { %936 = vmax.xlane.f32.xlu1 %v935_v47  ;;  %v1518_v48 = vpop.f32.mrf.mxu1  ;;  %v1499_v61 = vpop.f32.mrf.mxu0 }
 0x305   : > { %1526 = vmatpush3.bf16.msra.mxu1 %v727_v60 }
 0x306   : > { %v912_v49 = vpop.f32.mrf.mxu1  ;;  %v2078_v25 = vpop.f32.mrf.mxu0  ;;  %1531 = vmatprep.subr.bf16.mxu1 %v1754_v63 }
 0x307   : > { %v938_v50 = vsel %vm919_vm3, %v912_v49, -inf }
 0x308   : > { %939 = vmax.xlane.f32.xlu0 %v938_v50  ;;  %v1523_v51 = vpop.f32.mrf.mxu1  ;;  %v1500_v62 = vpop.f32.mrf.mxu0 }
 0x309   : > { %v730_v30 = vpack.c.bf16 %v1500_v62, %v1499_v61 }
 0x30a   : > { %v915_v52 = vpop.f32.mrf.mxu1  ;;  %v482_v56 = vpop.f32.mrf.mxu0 }
 0x30b   : > { %v941_v53 = vsel %vm919_vm3, %v915_v52, -inf  ;;  %1544 = vmatpush3.bf16.msra.mxu0 %v730_v30  ;;  %v729_v62 = vpack.c.bf16 %v482_v56, %v2078_v25 }
 0x30c   : > { %942 = vmax.xlane.f32.xlu1 %v941_v53  ;;  %v1524_v54 = vpop.f32.mrf.mxu1 }
 0x379   : > { %v922_v27 = vpop.xlane.xlu1 %921 }
 0x37a   : > { %v944_v17 = vsub.f32 %v771_v20, %v922_v27 }
 0x37c   : > { %v952_v24 = vmul.f32 1.442695, %v944_v17 }
 0x37d   : > { %v925_v0 = vpop.xlane.xlu0 %924 }
 0x37e   : > { %1659 = vpow2.f32 %v952_v24  ;;  %v945_v13 = vsub.f32 %v774_v29, %v925_v0 }
 0x380   : > { %v954_v1 = vmul.f32 1.442695, %v945_v13 }
 0x381   : > { %v928_v2 = vpop.xlane.xlu0 %927 }
 0x382   : > { %1661 = vpow2.f32 %v954_v1  ;;  %v946_v3 = vsub.f32 %v818_v33, %v928_v2 }
 0x384   : > { %v956_v4 = vmul.f32 1.442695, %v946_v3  ;;  %v1623_v3 = vld [vmem:[%s2175_s3 + $0x18] sm:$0xff]  }
 0x385   : > { %v931_v5 = vpop.xlane.xlu1 %930 }
 0x386   : > { %1663 = vpow2.f32 %v956_v4  ;;  %v947_v6 = vsub.f32 %v821_v38, %v931_v5  ;;  %v1625_v4 = vld [vmem:[%s2175_s3 + $0x8] sm:$0xff]   ;;  %v1626_v5 = vld [vmem:[%s2175_s3] sm:$0xff]  }
 0x388   : > { %v958_v7 = vmul.f32 1.442695, %v947_v6 }
 0x389   : > { %v934_v15 = vpop.xlane.xlu0 %933 }
 0x38a   : > { %1665 = vpow2.f32 %v958_v7  ;;  %v948_v42 = vsub.f32 %v865_v43, %v934_v15 }
 0x38b   : > { %v1660_v12 = vpop.eup %1659 }
 0x38c   : > { %v960_v37 = vmul.f32 1.442695, %v948_v42  ;;  %v968_v8 = vsel %vm919_vm3, %v1660_v12, 0.0 }
 0x38d   : > { %969 = vadd.xlane.f32.xlu0 %v968_v8  ;;  %v937_v9 = vpop.xlane.xlu1 %936 }
 0x38e   : > { %1667 = vpow2.f32 %v960_v37  ;;  %v949_v10 = vsub.f32 %v868_v46, %v937_v9 }
 0x38f   : > { %v1662_v11 = vpop.eup %1661 }
 0x390   : > { %v962_v14 = vmul.f32 1.442695, %v949_v10  ;;  %v971_v16 = vsel %vm919_vm3, %v1662_v11, 0.0 }
 0x391   : > { %v940_v21 = vpop.xlane.xlu0 %939  ;;  %972 = vadd.xlane.f32.xlu1 %v971_v16 }
 0x392   : > { %1669 = vpow2.f32 %v962_v14  ;;  %v950_v23 = vsub.f32 %v912_v49, %v940_v21 }
 0x393   : > { %v1664_v39 = vpop.eup %1663 }
 0x394   : > { %v964_v34 = vmul.f32 1.442695, %v950_v23  ;;  %v974_v18 = vsel %vm919_vm3, %v1664_v39, 0.0 }
 0x395   : > { %975 = vadd.xlane.f32.xlu0 %v974_v18  ;;  %v943_v19 = vpop.xlane.xlu1 %942 }
 0x396   : > { %1671 = vpow2.f32 %v964_v34  ;;  %v951_v22 = vsub.f32 %v915_v52, %v943_v19 }
 0x397   : > { %v1666_v20 = vpop.eup %1665 }
 0x398   : > { %v966_v26 = vmul.f32 1.442695, %v951_v22  ;;  %v977_v28 = vsel %vm919_vm3, %v1666_v20, 0.0 }
 0x399   : > { %978 = vadd.xlane.f32.xlu1 %v977_v28 }
 0x39a   : > { %1673 = vpow2.f32 %v966_v26 }
 0x39b   : > { %v1668_v29 = vpop.eup %1667 }
 0x39c   : > { %v980_v31 = vsel %vm919_vm3, %v1668_v29, 0.0 }
 0x39d   : > { %981 = vadd.xlane.f32.xlu0 %v980_v31 }
 0x39f   : > { %v1670_v32 = vpop.eup %1669 }
 0x3a0   : > { %v983_v33 = vsel %vm919_vm3, %v1670_v32, 0.0 }
 0x3a1   : > { %984 = vadd.xlane.f32.xlu1 %v983_v33 }
 0x3a3   : > { %v1672_v35 = vpop.eup %1671 }
 0x3a4   : > { %v986_v36 = vsel %vm919_vm3, %v1672_v35, 0.0 }
 0x3a5   : > { %987 = vadd.xlane.f32.xlu0 %v986_v36 }
 0x3a7   : > { %v1674_v38 = vpop.eup %1673 }
 0x3a8   : > { %v989_v40 = vsel %vm919_vm3, %v1674_v38, 0.0 }
 0x3a9   : > { %990 = vadd.xlane.f32.xlu1 %v989_v40 }
 0x416   : > { %v970_v41 = vpop.xlane.xlu0 %969 }
 0x417   : > { %1675 = vrcp.f32 %v970_v41 }
 0x41a   : > { %v973_v43 = vpop.xlane.xlu1 %972 }
 0x41b   : > { %1677 = vrcp.f32 %v973_v43 }
 0x41e   : > { %v976_v44 = vpop.xlane.xlu0 %975 }
 0x41f   : > { %1679 = vrcp.f32 %v976_v44 }
 0x422   : > { %v979_v45 = vpop.xlane.xlu1 %978 }
 0x423   : > { %1681 = vrcp.f32 %v979_v45 }
 0x424   : > { %v1676_v46 = vpop.eup %1675 }
 0x425   : > { %v1000_v49 = vmul.f32 %v1676_v46, %v1660_v12 }
 0x426   : > { %v982_v47 = vpop.xlane.xlu0 %981 }
 0x427   : > { %1683 = vrcp.f32 %v982_v47 }
 0x428   : > { %v1678_v48 = vpop.eup %1677 }
 0x429   : > { %v1001_v50 = vmul.f32 %v1678_v48, %v1662_v11 }
 0x42a   : > { %v985_v51 = vpop.xlane.xlu1 %984 }
 0x42b   : > { %1685 = vrcp.f32 %v985_v51  ;;  %v1008_v52 = vpack.c.bf16 %v1001_v50, %v1000_v49 }
 0x42c   : > { %v1680_v53 = vpop.eup %1679 }
 0x42d   : > { %1528 = vmatmul.mubr.msk.bf16.vlgmr.msra.gmra.mxu1 %vm919_vm3, %v1008_v52  ;;  %v1002_v60 = vmul.f32 %v1680_v53, %v1664_v39 }
 0x42e   : > { %1532 = vmatpush3.bf16.msra.mxu1 %v728_v58  ;;  %v988_v54 = vpop.xlane.xlu0 %987  ;;  %1533 = vmatprep.mubr.msk.bf16.mxu1 %vm1755_vm2, %v1754_v63 }
 0x42f   : > { %1537 = vmatprep.subr.bf16.mxu1 %v1754_v63  ;;  %1687 = vrcp.f32 %v988_v54 }
 0x430   : > { %v1682_v59 = vpop.eup %1681 }
 0x431   : > { %v1003_v61 = vmul.f32 %v1682_v59, %v1666_v20 }
 0x432   : > { %v991_v30 = vpop.xlane.xlu1 %990 }
 0x433   : > { %1689 = vrcp.f32 %v991_v30  ;;  %v1009_v27 = vpack.c.bf16 %v1003_v61, %v1002_v60 }
 0x434   : > { %v1684_v55 = vpop.eup %1683 }
 0x435   : > { %1534 = vmatmul.mubr.msk.bf16.vlgmr.msra.gmra.mxu1 %vm919_vm3, %v1009_v27  ;;  %v1004_v58 = vmul.f32 %v1684_v55, %v1668_v29  ;;  %v1423_v29 = vld [vmem:[%s2176_s4] ss:$0 sm:$0xff] }
 0x436   : > { %1538 = vmatpush3.bf16.msra.mxu1 %v729_v62  ;;  %1539 = vmatprep.mubr.msk.bf16.mxu1 %vm1755_vm2, %v1754_v63  ;;  %v1624_v63 = vld [vmem:[%s2175_s3 + $0x10] sm:$0xff]  }
 0x437   : > { %1549 = vmatprep.subr.bf16.mxu1 %v1623_v3 }
 0x438   : > { %v1686_v57 = vpop.eup %1685 }
 0x439   : > { %v1005_v17 = vmul.f32 %v1686_v57, %v1670_v32 }
 0x43b   : > { %v1010_v24 = vpack.c.bf16 %v1005_v17, %v1004_v58 }
 0x43c   : > { %v1688_v0 = vpop.eup %1687 }
 0x43d   : > { %1540 = vmatmul.mubr.msk.bf16.vlgmr.msra.gmra.mxu1 %vm919_vm3, %v1010_v24  ;;  %v1006_v1 = vmul.f32 %v1688_v0, %v1672_v35 }
 0x43e   : > { %1550 = vmatpush3.bf16.msra.mxu1 %v1623_v3 }
 0x43f   : > { %1551 = vmatprep.subr.bf16.mxu1 %v1624_v63 }
 0x440   : > { %v1690_v13 = vpop.eup %1689 }
 0x441   : > { %v1007_v25 = vmul.f32 %v1690_v13, %v1674_v38 }
 0x442   : > { %1552 = vmatpush3.bf16.msra.mxu1 %v1624_v63 }
 0x443   : > { %v1011_v2 = vpack.c.bf16 %v1007_v25, %v1006_v1  ;;  %1553 = vmatprep.subr.bf16.mxu1 %v1625_v4 }
 0x445   : > { %1546 = vmatmul.mubr.msk.bf16.vlgmr.msra.gmra.mxu0 %vm919_vm3, %v1011_v2 }
 0x446   : > { %1554 = vmatpush3.bf16.msra.mxu1 %v1625_v4 }
 0x447   : > { %1555 = vmatprep.subr.bf16.mxu1 %v1626_v5 }
 0x44a   : > { %1556 = vmatpush3.bf16.msra.mxu1 %v1626_v5 }
 0x4ed   : > { %v1049_v6 = vpop.f32.mrf.mxu1 }
 0x4ef   : > { %v1529_v7 = vpop.f32.mrf.mxu1 }
 0x4f1   : > { %v1052_v15 = vpop.f32.mrf.mxu1 }
 0x4f2   : > { %v1188_v42 = vpack.c.bf16 %v1052_v15, %v1049_v6 }
 0x4f3   : > { %v1530_v12 = vpop.f32.mrf.mxu1 }
 0x4f4   : > { %1207 = vxpose.xlu0.c.b16.start [1/4] (short) (narrow) %v1188_v42, 32 }
 0x4f5   : > { %v1093_v37 = vpop.f32.mrf.mxu1 }
 0x4f7   : > { %v1535_v8 = vpop.f32.mrf.mxu1 }
 0x4f9   : > { %v1096_v9 = vpop.f32.mrf.mxu1 }
 0x4fa   : > { %v1189_v10 = vpack.c.bf16 %v1096_v9, %v1093_v37 }
 0x4fb   : > { %v1536_v11 = vpop.f32.mrf.mxu1 }
 0x4fc   : > { %1208 = vxpose.xlu0.c.b16.cont [2/4] (short) (narrow) %v1189_v10, 32 }
 0x4fd   : > { %v1137_v14 = vpop.f32.mrf.mxu1 }
 0x4ff   : > { %v1541_v16 = vpop.f32.mrf.mxu1 }
 0x501   : > { %v1140_v21 = vpop.f32.mrf.mxu1 }
 0x502   : > { %v1190_v23 = vpack.c.bf16 %v1140_v21, %v1137_v14 }
 0x503   : > { %v1542_v39 = vpop.f32.mrf.mxu1 }
 0x504   : > { %1209 = vxpose.xlu0.c.b16.cont [3/4] (short) (narrow) %v1190_v23, 32 }
 0x505   : > { %v1181_v34 = vpop.f32.mrf.mxu0 }
 0x507   : > { %v1547_v18 = vpop.f32.mrf.mxu0 }
 0x509   : > { %v1184_v19 = vpop.f32.mrf.mxu0 }
 0x50a   : > { %v1191_v22 = vpack.c.bf16 %v1184_v19, %v1181_v34 }
 0x50b   : > { %v1548_v20 = vpop.f32.mrf.mxu0 }
 0x50c   : > { %1210 = vxpose.xlu0.c.b16.end [4/4] (short) (narrow) %v1191_v22, 32 }
 0x562   : > { %v1215_v26 = vpop.trf.xlu0 }
 0x563   : > { %1557 = vmatprep.mubr.msk.bf16.mxu1 %vm322_vm0, %v1215_v26 }
 0x566   : > { %v1216_v28 = vpop.trf.xlu0 }
 0x567   : > { %1558 = vmatmul.mubr.msk.bf16.vlgmr.msra.gmra.mxu1 %vm322_vm0, %v1216_v28 }
 0x627   : > { %v1559_v31 = vpop.f32.mrf.mxu1 }
 0x628   : > { %v1296_v32 = vadd.f32 %v1559_v31, %v1423_v29 }
 0x629   : > { %v1287_v33 = vpop.f32.mrf.mxu1 }
 0x62a   : > { %1304 = vst.msk [vmem:[%s217_s14 + $0x10] sm:$0xff] %vm322_vm0, %v1296_v32  ;;  %v1288_v35 = vadd.f32 %v1423_v29, %v1287_v33 }
 0x62b   : > { %v1560_v36 = vpop.f32.mrf.mxu1 }
 0x62c   : > { %1302 = vst.msk [vmem:[%s217_s14] sm:$0xff] %vm322_vm0, %v1288_v35  ;;  %v1299_v38 = vadd.f32 %v1560_v36, %v1423_v29 }
 0x62d   : > { %v1290_v40 = vpop.f32.mrf.mxu1 }
 0x62e   : > { %1305 = vst.msk [vmem:[%s217_s14 + $0x18] sm:$0xff] %vm322_vm0, %v1299_v38  ;;  %v1291_v41 = vadd.f32 %v1423_v29, %v1290_v40 }
 0x630   : > { %1303 = vst.msk [vmem:[%s217_s14 + $0x8] sm:$0xff] %vm322_vm0, %v1291_v41 }
 0x631   : > { %1704 = shalt.err (!%p1701_p3)
}
 0x632   : > { %s1705_s8 = scalar_lea.hbm %s2129_s25, 512  ;;  %s1709_s11 = scalar_lea.hbm %s2177_s5, 1024 }
 0x633   : > { %p1706_p4 = scmp.ne.s32.totalorder %s2129_s25, %s1705_s8  ;;  %p1710_p9 = scmp.lt.s32.totalorder %s2129_s25, %s2177_s5 }
 0x634   : > { %p1711_p10 = scmp.lt.s32.totalorder %s1709_s11, %s1705_s8 }
 0x635   : > { %p1707_p7 = pnand %p1706_p4, %p1827_p5 }
 0x636   : > { %p1712_p11 = por %p1711_p10, %p1710_p9 }
 0x637   : > { %p1708_p8 = pneg %p1707_p7 }
 0x639   : > { %p1713_p12 = pnand %p1712_p11, %p1708_p8 }
 0x63b   : > { %1716 = shalt.err (!%p1713_p12)
}
 0x63c   : > { %s1757_s14 = smov 128   ;;  %s1758_s16 = smov 8  }
 0x63d   : > { %1563 = dma.vmem_to_hbm [thread:$0]  (%p1827_p5), %s2123_s15, 512, %s2129_s25, %s2132_s22, %s1757_s14, %s1757_s14, %s1758_s16  }
 0x63e PF: > { %p1569_p13 = scmp.ge.s32.totalorder %s1751_s21, 2  ;;  %s1335_s17 = sand.u32 1, %s1739_s18  }
 0x63f   : > { %s1336_s23 = scalar_lea.sflag [#allocation3], %s1335_s17 }
 0x640   : > { %p1566_p0 = pnand %p1569_p13, %p1831_p6 }
 0x642   : > { %p1567_p1 = pneg %p1566_p0 }
 0x644   : > { %1734 = dma.done.wait (%p1567_p1), %s1336_s23, 512  }
 0x645   : > { %1736 = vsyncadd (%p1567_p1), %s1336_s23, 4294966784  ;;  %p15_p2 = scmp.ge.s32.totalorder %s1814_s24, 4   ;;  %s2180_s18 = smov %s1743_s19 }
 0x646   : > { %s2181_s19 = smov %s1747_s20  ;;  %s2182_s20 = smov %s1825_s27 }
 0x647   : > { %s2183_s21 = smov %s1814_s24  ;;  %17 = sbr.rel (!%p15_p2) target bundleno = 3 (0x3), region = 75 }
 0x64c   :  { %1341 = vsyncpa [#allocation3], 1 }
 0x64d   :  { %1343 = vsyncpa [#allocation3 + $0x1], 1 }

</bundles_post_ra>
